<compile_context>
chip_gen: v5e
topology: v5e:2x2
jax: 0.10.0
libtpu: 0.0.40
codegen_flags: <defaults>
</compile_context>

<pallas_src>
import math

import jax
import jax.numpy as jnp
from jax.experimental import pallas as pl
from jax.experimental.pallas import tpu as pltpu

LANE = 128
SUBLANE = 8


def _round_up(n, m):
    return ((n + m - 1) // m) * m


# ----------------------------------------------------------------------------
# Pallas kernel: fused MLP in the transposed (features-on-sublanes) layout
# ----------------------------------------------------------------------------
def pinn_kernel(xT_ref, w_in_ref, b_in_ref, w_h_ref, b_h_ref,
                w_out_ref, b_out_ref, o_ref):
    """Shapes inside one grid step (tb = batch tile on the lane axis):

      xT_ref    : (in_pad, tb)      in_pad  = round_up(N_INPUT, 8)
      w_in_ref  : (h_pad, in_pad)   W_in^T
      b_in_ref  : (h_pad, 1)
      w_h_ref   : (L, h_pad, h_pad) W_l^T,  L = N_FLAYERS - 1
      b_h_ref   : (L, h_pad, 1)
      w_out_ref : (out_pad, h_pad)  W_out^T, out_pad = round_up(N_OUTPUT, 8)
      b_out_ref : (out_pad, 1)
      o_ref     : (out_pad, tb)
    """
    # Input layer: Linear + Tanh     h^T = tanh(W_in^T x^T + b_in^T)
    h = jnp.tanh(
        jnp.dot(w_in_ref[...], xT_ref[...], preferred_element_type=jnp.float32)
        + b_in_ref[...])

    # Hidden layers: (N_FLAYERS-1) x [Linear + Tanh]  (static unrolled loop)
    for l in range(w_h_ref.shape[0]):
        h = jnp.tanh(
            jnp.dot(w_h_ref[l], h, preferred_element_type=jnp.float32)
            + b_h_ref[l])

    # Output layer: Linear + Softplus (numerically stable form)
    z = (jnp.dot(w_out_ref[...], h, preferred_element_type=jnp.float32)
         + b_out_ref[...])
    o_ref[...] = jnp.maximum(z, 0.0) + jnp.log1p(jnp.exp(-jnp.abs(z)))


# ----------------------------------------------------------------------------
# Wrapper: batch-gridded pallas_call (batch on lanes, features on sublanes)
# ----------------------------------------------------------------------------
def pinn_forward(x, tpu_params, n_output, *, tb=2048):
    """Fused PINN forward.  `tpu_params` from prep_params_for_tpu().

    tb: requested batch-tile width along the lane axis.  It is rounded to a
    multiple of 128 and reduced when that allows >= 2 grid steps (so both
    v7x TensorCores get work).
    """
    w_in_t, b_in_t, w_h_t, b_h_t, w_out_t, b_out_t = tpu_params
    B, n_in = x.shape
    h_pad, in_pad = w_in_t.shape
    out_pad = w_out_t.shape[0]
    L = w_h_t.shape[0]

    # Batch tile: multiple of the 128-lane granularity; padded batch columns
    # compute garbage that is sliced away.
    b_round = _round_up(B, LANE)
    tb = max(LANE, (min(tb, b_round) // LANE) * LANE)
    if b_round // tb < 2 and b_round >= 2 * LANE:
        tb = _round_up(b_round // 2, LANE)      # >= 2 grid steps for megacore
    b_pad = _round_up(b_round, tb)
    grid = (b_pad // tb,)

    # Transposed, zero-padded input slab (zero rows stay inert downstream).
    x_t = jnp.zeros((in_pad, b_pad), jnp.float32).at[:n_in, :B].set(
        x.astype(jnp.float32).T)

    # Advisory cost estimate from the REAL (unpadded) dims.
    flops = 2 * B * (n_in * h_pad + L * h_pad * h_pad + h_pad * n_output)
    transcendentals = B * ((L + 1) * h_pad + 2 * n_output)
    bytes_accessed = 4 * (B * n_in + B * n_output + w_in_t.size + b_in_t.size
                          + w_h_t.size + b_h_t.size + w_out_t.size
                          + b_out_t.size)

    # Generation-aware VMEM limit: this kernel needs well under 32 MiB; never
    # request more than ~60% of physical VMEM (64 MiB per TC on v7x).
    vmem_limit = 32 * 1024 * 1024
    try:
        vmem_limit = min(vmem_limit,
                         int(pltpu.get_tpu_info().vmem_capacity_bytes * 0.6))
    except Exception:
        pass

    out = pl.pallas_call(
        pinn_kernel,
        out_shape=jax.ShapeDtypeStruct((out_pad, b_pad), jnp.float32),
        grid=grid,
        in_specs=[
            # Activations: tiled along the batch (lane) grid axis.
            pl.BlockSpec((in_pad, tb), lambda i: (0, i)),
            # Weights / biases: constant index_maps -> VMEM-resident, DMA once.
            pl.BlockSpec((h_pad, in_pad), lambda i: (0, 0)),
            pl.BlockSpec((h_pad, 1), lambda i: (0, 0)),
            pl.BlockSpec((L, h_pad, h_pad), lambda i: (0, 0, 0)),
            pl.BlockSpec((L, h_pad, 1), lambda i: (0, 0, 0)),
            pl.BlockSpec((out_pad, h_pad), lambda i: (0, 0)),
            pl.BlockSpec((out_pad, 1), lambda i: (0, 0)),
        ],
        out_specs=pl.BlockSpec((out_pad, tb), lambda i: (0, i)),
        compiler_params=pltpu.CompilerParams(
            dimension_semantics=("parallel",),   # megacore sharding on v7x
            vmem_limit_bytes=vmem_limit,
        ),
        cost_estimate=pl.CostEstimate(
            flops=int(flops),
            transcendentals=int(transcendentals),
            bytes_accessed=int(bytes_accessed),
        ),
    )(x_t, w_in_t, b_in_t, w_h_t, b_h_t, w_out_t, b_out_t)

    # Drop padded sublanes / lanes and restore the (B, N_OUTPUT) orientation.
    return out[:n_output, :B].T


# ----------------------------------------------------------------------------
# Deterministic parameter init (matches nn.Linear init in the module:
# xavier_uniform_ for weights, uniform(0.01, 0.2) for biases)
# ----------------------------------------------------------------------------
def xavier_uniform(key, fan_in, fan_out):
    bound = math.sqrt(6.0 / (fan_in + fan_out))
    # stored as (in, out) — transpose of PyTorch's (out, in)
    return jax.random.uniform(key, (fan_in, fan_out), jnp.float32,
                              minval=-bound, maxval=bound)


def bias_uniform(key, fan_out):
    return jax.random.uniform(key, (1, fan_out), jnp.float32,
                              minval=0.01, maxval=0.2)


def init_pinn_params(key, n_input, n_output, n_hidden, n_flayers):
    assert n_flayers >= 2, "need at least one hidden Linear+Tanh block"
    keys = jax.random.split(key, 2 * (n_flayers + 1))
    w_in = xavier_uniform(keys[0], n_input, n_hidden)
    b_in = bias_uniform(keys[1], n_hidden)

    n_hidden_layers = n_flayers - 1
    w_h = jnp.stack([xavier_uniform(keys[2 + 2 * l], n_hidden, n_hidden)
                     for l in range(n_hidden_layers)], axis=0)   # (L-1, H, H)
    b_h = jnp.stack([bias_uniform(keys[3 + 2 * l], n_hidden)
                     for l in range(n_hidden_layers)], axis=0)   # (L-1, 1, H)

    w_out = xavier_uniform(keys[2 * n_flayers], n_hidden, n_output)
    b_out = bias_uniform(keys[2 * n_flayers + 1], n_output)
    return (w_in, b_in, w_h, b_h, w_out, b_out)


def prep_params_for_tpu(params, sublane=SUBLANE):
    """Transpose weights (W^T) and zero-pad feature dims to SUBLANE multiples.

    In the transposed layout features live on the sublane axis, so they only
    need padding to multiples of 8 (not 128).  Padded weight rows/columns and
    bias entries are zero, so tanh(0)=0 keeps padded hidden sublanes inert and
    padded output sublanes are sliced off in the wrapper.  NOTE: parameters
    imported from elsewhere (e.g. PyTorch) must preserve this zero-padding
    invariant.
    """
    w_in, b_in, w_h, b_h, w_out, b_out = params
    n_in, n_hidden = w_in.shape
    n_out = w_out.shape[1]
    L = w_h.shape[0]
    in_pad = _round_up(n_in, sublane)
    h_pad = _round_up(n_hidden, sublane)
    out_pad = _round_up(n_out, sublane)

    def pad2(a, r, c):
        return jnp.zeros((r, c), a.dtype).at[:a.shape[0], :a.shape[1]].set(a)

    w_in_t = pad2(w_in.T, h_pad, in_pad)                      # (h_pad, in_pad)
    b_in_t = pad2(b_in.T, h_pad, 1)                           # (h_pad, 1)
    w_h_t = jnp.zeros((L, h_pad, h_pad), w_h.dtype).at[
        :, :n_hidden, :n_hidden].set(jnp.swapaxes(w_h, 1, 2))  # (L, h_pad, h_pad)
    b_h_t = jnp.zeros((L, h_pad, 1), b_h.dtype).at[
        :, :n_hidden, :].set(jnp.swapaxes(b_h, 1, 2))           # (L, h_pad, 1)
    w_out_t = pad2(w_out.T, out_pad, h_pad)                    # (out_pad, h_pad)
    b_out_t = pad2(b_out.T, out_pad, 1)                        # (out_pad, 1)
    return (w_in_t, b_in_t, w_h_t, b_h_t, w_out_t, b_out_t)


# Pure-JAX reference (same math, unpadded, row-batch layout) for sanity check.
def pinn_reference(x, params):
    w_in, b_in, w_h, b_h, w_out, b_out = params
    h = jnp.tanh(x @ w_in + b_in)
    for l in range(w_h.shape[0]):
        h = jnp.tanh(h @ w_h[l] + b_h[l])
    z = h @ w_out + b_out
    return jnp.maximum(z, 0.0) + jnp.log1p(jnp.exp(-jnp.abs(z)))


if __name__ == "__main__":
    # Small shapes consistent with a PINN: batch of collocation points with a
    # couple of input coordinates, a few outputs.
    B, N_INPUT, N_OUTPUT, N_HIDDEN, N_FLAYERS = 8, 2, 3, 32, 3

    key = jax.random.PRNGKey(0)
    k_x, k_p = jax.random.split(key)
    x = jax.random.normal(k_x, (B, N_INPUT), dtype=jnp.float32)

    params = init_pinn_params(k_p, N_INPUT, N_OUTPUT, N_HIDDEN, N_FLAYERS)
    tpu_params = prep_params_for_tpu(params)

    out = pinn_forward(x, tpu_params, N_OUTPUT)
    out = jax.block_until_ready(out)

    ref = pinn_reference(x, params)
    assert out.shape == (B, N_OUTPUT)
    assert jnp.allclose(out, ref, atol=1e-4, rtol=1e-4), \
        float(jnp.max(jnp.abs(out - ref)))

    print("KERNEL_OK")
</pallas_src>

<mosaic_0001>
module attributes {stable_mosaic.version = 11 : i64} {
  func.func @pinn_kernel(%arg0: i32, %arg1: memref<8x128xf32, #tpu.memory_space<vmem>>, %arg2: memref<32x8xf32, #tpu.memory_space<vmem>>, %arg3: memref<32x1xf32, #tpu.memory_space<vmem>>, %arg4: memref<2x32x32xf32, #tpu.memory_space<vmem>>, %arg5: memref<2x32x1xf32, #tpu.memory_space<vmem>>, %arg6: memref<8x32xf32, #tpu.memory_space<vmem>>, %arg7: memref<8x1xf32, #tpu.memory_space<vmem>>, %arg8: memref<8x128xf32, #tpu.memory_space<vmem>>) attributes {dimension_semantics = [#tpu.dimension_semantics<parallel>], iteration_bounds = array<i64: 1>, scalar_prefetch = 0 : i64, scratch_operands = 0 : i64, tpu.core_type = #tpu.core_type<tc>, window_params = [{transform_indices = @transform_0, window_bounds = array<i64: 8, 128>}, {pipeline_mode = #tpu.pipeline_mode<synchronous>, transform_indices = @transform_1, window_bounds = array<i64: 32, 8>}, {pipeline_mode = #tpu.pipeline_mode<synchronous>, transform_indices = @transform_2, window_bounds = array<i64: 32, 1>}, {pipeline_mode = #tpu.pipeline_mode<synchronous>, transform_indices = @transform_3, window_bounds = array<i64: 2, 32, 32>}, {pipeline_mode = #tpu.pipeline_mode<synchronous>, transform_indices = @transform_4, window_bounds = array<i64: 2, 32, 1>}, {pipeline_mode = #tpu.pipeline_mode<synchronous>, transform_indices = @transform_5, window_bounds = array<i64: 8, 32>}, {pipeline_mode = #tpu.pipeline_mode<synchronous>, transform_indices = @transform_6, window_bounds = array<i64: 8, 1>}, {transform_indices = @transform_7, window_bounds = array<i64: 8, 128>}]} {
    %c0 = arith.constant 0 : index
    %c0_0 = arith.constant 0 : index
    %0 = vector.load %arg2[%c0, %c0_0] : memref<32x8xf32, #tpu.memory_space<vmem>>, vector<32x8xf32>
    %c0_1 = arith.constant 0 : index
    %c0_2 = arith.constant 0 : index
    %1 = vector.load %arg1[%c0_1, %c0_2] : memref<8x128xf32, #tpu.memory_space<vmem>>, vector<8x128xf32>
    %cst = arith.constant dense<0.000000e+00> : vector<32x128xf32>
    %2 = tpu.matmul %0, %1, %cst {dimension_numbers = #tpu.dot_dimension_numbers<[1], [0], [0], [1], [0, 0, 1, 1], [], []>} : vector<32x8xf32>, vector<8x128xf32>, vector<32x128xf32> -> vector<32x128xf32>
    %c0_3 = arith.constant 0 : index
    %c0_4 = arith.constant 0 : index
    %3 = vector.load %arg3[%c0_3, %c0_4] : memref<32x1xf32, #tpu.memory_space<vmem>>, vector<32x1xf32>
    %4 = vector.broadcast %3 : vector<32x1xf32> to vector<32x128xf32>
    %5 = arith.addf %2, %4 : vector<32x128xf32>
    %6 = math.tanh %5 : vector<32x128xf32>
    %c0_5 = arith.constant 0 : index
    %c0_6 = arith.constant 0 : index
    %c0_7 = arith.constant 0 : index
    %7 = vector.load %arg4[%c0_5, %c0_6, %c0_7] : memref<2x32x32xf32, #tpu.memory_space<vmem>>, vector<1x32x32xf32>
    %8 = vector.shape_cast %7 : vector<1x32x32xf32> to vector<32x32xf32>
    %cst_8 = arith.constant dense<0.000000e+00> : vector<32x128xf32>
    %9 = tpu.matmul %8, %6, %cst_8 {dimension_numbers = #tpu.dot_dimension_numbers<[1], [0], [0], [1], [0, 0, 1, 1], [], []>} : vector<32x32xf32>, vector<32x128xf32>, vector<32x128xf32> -> vector<32x128xf32>
    %c0_9 = arith.constant 0 : index
    %c0_10 = arith.constant 0 : index
    %c0_11 = arith.constant 0 : index
    %10 = vector.load %arg5[%c0_9, %c0_10, %c0_11] : memref<2x32x1xf32, #tpu.memory_space<vmem>>, vector<1x32x1xf32>
    %11 = vector.shape_cast %10 : vector<1x32x1xf32> to vector<32x1xf32>
    %12 = vector.broadcast %11 : vector<32x1xf32> to vector<32x128xf32>
    %13 = arith.addf %9, %12 : vector<32x128xf32>
    %14 = math.tanh %13 : vector<32x128xf32>
    %c1 = arith.constant 1 : index
    %c0_12 = arith.constant 0 : index
    %c0_13 = arith.constant 0 : index
    %15 = vector.load %arg4[%c1, %c0_12, %c0_13] : memref<2x32x32xf32, #tpu.memory_space<vmem>>, vector<1x32x32xf32>
    %16 = vector.shape_cast %15 : vector<1x32x32xf32> to vector<32x32xf32>
    %cst_14 = arith.constant dense<0.000000e+00> : vector<32x128xf32>
    %17 = tpu.matmul %16, %14, %cst_14 {dimension_numbers = #tpu.dot_dimension_numbers<[1], [0], [0], [1], [0, 0, 1, 1], [], []>} : vector<32x32xf32>, vector<32x128xf32>, vector<32x128xf32> -> vector<32x128xf32>
    %c1_15 = arith.constant 1 : index
    %c0_16 = arith.constant 0 : index
    %c0_17 = arith.constant 0 : index
    %18 = vector.load %arg5[%c1_15, %c0_16, %c0_17] : memref<2x32x1xf32, #tpu.memory_space<vmem>>, vector<1x32x1xf32>
    %19 = vector.shape_cast %18 : vector<1x32x1xf32> to vector<32x1xf32>
    %20 = vector.broadcast %19 : vector<32x1xf32> to vector<32x128xf32>
    %21 = arith.addf %17, %20 : vector<32x128xf32>
    %22 = math.tanh %21 : vector<32x128xf32>
    %c0_18 = arith.constant 0 : index
    %c0_19 = arith.constant 0 : index
    %23 = vector.load %arg6[%c0_18, %c0_19] : memref<8x32xf32, #tpu.memory_space<vmem>>, vector<8x32xf32>
    %cst_20 = arith.constant dense<0.000000e+00> : vector<8x128xf32>
    %24 = tpu.matmul %23, %22, %cst_20 {dimension_numbers = #tpu.dot_dimension_numbers<[1], [0], [0], [1], [0, 0, 1, 1], [], []>} : vector<8x32xf32>, vector<32x128xf32>, vector<8x128xf32> -> vector<8x128xf32>
    %c0_21 = arith.constant 0 : index
    %c0_22 = arith.constant 0 : index
    %25 = vector.load %arg7[%c0_21, %c0_22] : memref<8x1xf32, #tpu.memory_space<vmem>>, vector<8x1xf32>
    %26 = vector.broadcast %25 : vector<8x1xf32> to vector<8x128xf32>
    %27 = arith.addf %24, %26 : vector<8x128xf32>
    %cst_23 = arith.constant 0.000000e+00 : f32
    %28 = vector.broadcast %cst_23 : f32 to vector<8x128xf32>
    %29 = arith.maximumf %27, %28 : vector<8x128xf32>
    %30 = math.absf %27 : vector<8x128xf32>
    %cst_24 = arith.constant 0.000000e+00 : f32
    %31 = vector.broadcast %cst_24 : f32 to vector<8x128xf32>
    %32 = arith.subf %31, %30 : vector<8x128xf32>
    %33 = math.exp %32 : vector<8x128xf32>
    %34 = math.log1p %33 : vector<8x128xf32>
    %35 = arith.addf %29, %34 : vector<8x128xf32>
    %c0_25 = arith.constant 0 : index
    %c0_26 = arith.constant 0 : index
    %36 = vector.load %arg8[%c0_25, %c0_26] : memref<8x128xf32, #tpu.memory_space<vmem>>, vector<8x128xf32>
    tpu.vector_store %arg8[%c0_25, %c0_26], %35 {strides = array<i32>} : memref<8x128xf32, #tpu.memory_space<vmem>>, vector<8x128xf32>,
    return
  }
  func.func @transform_0(%arg0: i32) -> (i32, i32) {
    %c0_i32 = arith.constant 0 : i32
    %c0_i32_0 = arith.constant 0 : i32
    return %c0_i32, %arg0 : i32, i32
  }
  func.func @transform_1(%arg0: i32) -> (i32, i32) {
    %c0_i32 = arith.constant 0 : i32
    %c0_i32_0 = arith.constant 0 : i32
    %c0_i32_1 = arith.constant 0 : i32
    return %c0_i32, %c0_i32_0 : i32, i32
  }
  func.func @transform_2(%arg0: i32) -> (i32, i32) {
    %c0_i32 = arith.constant 0 : i32
    %c0_i32_0 = arith.constant 0 : i32
    %c0_i32_1 = arith.constant 0 : i32
    return %c0_i32, %c0_i32_0 : i32, i32
  }
  func.func @transform_3(%arg0: i32) -> (i32, i32, i32) {
    %c0_i32 = arith.constant 0 : i32
    %c0_i32_0 = arith.constant 0 : i32
    %c0_i32_1 = arith.constant 0 : i32
    %c0_i32_2 = arith.constant 0 : i32
    return %c0_i32, %c0_i32_0, %c0_i32_1 : i32, i32, i32
  }
  func.func @transform_4(%arg0: i32) -> (i32, i32, i32) {
    %c0_i32 = arith.constant 0 : i32
    %c0_i32_0 = arith.constant 0 : i32
    %c0_i32_1 = arith.constant 0 : i32
    %c0_i32_2 = arith.constant 0 : i32
    return %c0_i32, %c0_i32_0, %c0_i32_1 : i32, i32, i32
  }
  func.func @transform_5(%arg0: i32) -> (i32, i32) {
    %c0_i32 = arith.constant 0 : i32
    %c0_i32_0 = arith.constant 0 : i32
    %c0_i32_1 = arith.constant 0 : i32
    return %c0_i32, %c0_i32_0 : i32, i32
  }
  func.func @transform_6(%arg0: i32) -> (i32, i32) {
    %c0_i32 = arith.constant 0 : i32
    %c0_i32_0 = arith.constant 0 : i32
    %c0_i32_1 = arith.constant 0 : i32
    return %c0_i32, %c0_i32_0 : i32, i32
  }
  func.func @transform_7(%arg0: i32) -> (i32, i32) {
    %c0_i32 = arith.constant 0 : i32
    %c0_i32_0 = arith.constant 0 : i32
    return %c0_i32, %arg0 : i32, i32
  }
}

</mosaic_0001>

<bundles_post_ra>
// kernel: tpu_custom_call.1
= control target key start
LH: loop header
LB: loop body
LE: loop exit
PB: predicated region body
PF: predicated region fallthrough
CT: control target
= control target key end

     0   :  { %vm56_vm0 = vcmask 64512   ;;  %v401_v3 = vmov 0   ;;  %s540_s0 = inlined_call_operand.vmem [shape: f32[8,128], index: 0, kind: input, shape index: {}]   ;;  %s541_s1 = inlined_call_operand.vmem [shape: f32[32,8], index: 1, kind: input, shape index: {}]   ;;  %s542_s2 = inlined_call_operand.vmem [shape: f32[32,1], index: 2, kind: input, shape index: {}]   ;;  %s543_s3 = inlined_call_operand.vmem [shape: f32[2,32,32], index: 3, kind: input, shape index: {}]   ;;  %s544_s4 = inlined_call_operand.vmem [shape: f32[2,32,1], index: 4, kind: input, shape index: {}]   ;;  %s545_s5 = inlined_call_operand.vmem [shape: f32[8,32], index: 5, kind: input, shape index: {}]   ;;  %s546_s6 = inlined_call_operand.vmem [shape: f32[8,1], index: 6, kind: input, shape index: {}]   ;;  %s547_s7 = inlined_call_operand.hbm [shape: f32[8,128], index: 7, kind: output, shape index: {}]  }
   0x1   :  { %v31_v0 = vld [vmem:[%s540_s0] sm:$0xff]  ;;  %v35_v1 = vld [vmem:[%s542_s2 + $0x18] sm:$0xff]  ;;  %344 = vset.pattern.permute.xlu0 %v401_v3  ;;  %v33_v4 = vld [vmem:[%s542_s2 + $0x8] sm:$0xff]  ;;  %345 = vset.pattern.permute.xlu1 %v401_v3 }
   0x2   :  { %v27_v2 = vld [vmem:[%s541_s1] sm:$0xff]  ;;  %84 = vmatpush.msra.mxu0 %v31_v0  ;;  %53 = vperm.xlu0 %344, %v35_v1  }
   0x3   :  { %313 = vmatmul.msk.f32.vlgmr.msra.gmra.mxu0 %vm56_vm0, %v27_v2  ;;  %346 = vset.pattern.permute.xlu2 %v401_v3 }
   0x4   :  { %43 = vperm.xlu1 %345, %v33_v4  }
   0x5   :  { %12 = vsyncpa [#allocation3], 0  ;;  %v34_v5 = vld [vmem:[%s542_s2 + $0x10] sm:$0xff]  ;;  %v28_v6 = vld [vmem:[%s541_s1 + $0x8] sm:$0xff]  ;;  %vm130_vm1 = vcmask 261120  }
   0x6   :  { %v32_v7 = vld [vmem:[%s542_s2] sm:$0xff]  ;;  %v107_v8 = vld [vmem:[%s544_s4 + $0x8] sm:$0xff]  ;;  %v29_v9 = vld [vmem:[%s541_s1 + $0x10] sm:$0xff] }
   0x7   :  { %v106_v10 = vld [vmem:[%s544_s4] sm:$0xff]  ;;  %v327_v11 = vld [vmem:[%s544_s4 + $0x30] sm:$0xff]  ;;  %v30_v12 = vld [vmem:[%s541_s1 + $0x18] sm:$0xff]  ;;  %s304_s1 = sshll.u32 %s547_s7, 4  ;;  %s305_s1 = int_to_ptr.hbm [resolvable:$true] %s304_s1 }
   0x8   :  { %v326_v13 = vld [vmem:[%s544_s4 + $0x28] sm:$0xff]  ;;  %v252_v14 = vld [vmem:[%s546_s6] sm:$0xff]  ;;  %v109_v24 = vld [vmem:[%s544_s4 + $0x18] sm:$0xff] }
   0x9   :  { %127 = vperm.xlu2 %346, %v109_v24   ;;  %v108_v28 = vld [vmem:[%s544_s4 + $0x10] sm:$0xff]  ;;  %v102_v32 = vld [vmem:[%s543_s3] sm:$0xff]  ;;  %v105_v33 = vld [vmem:[%s543_s3 + $0x18] sm:$0xff] }
   0xa   :  { %48 = vperm.xlu0 %344, %v34_v5   ;;  %v328_v35 = vld [vmem:[%s544_s4 + $0x38] sm:$0xff]  ;;  %v103_v36 = vld [vmem:[%s543_s3 + $0x8] sm:$0xff]  ;;  %v325_v37 = vld [vmem:[%s544_s4 + $0x20] sm:$0xff] }
   0xb   :  { %314 = vmatmul.msk.f32.gmra.mxu0 %vm56_vm0, %v28_v6  ;;  %v104_v38 = vld [vmem:[%s543_s3 + $0x10] sm:$0xff]  ;;  %v321_v54 = vld [vmem:[%s543_s3 + $0x20] sm:$0xff]  ;;  %v324_v55 = vld [vmem:[%s543_s3 + $0x38] sm:$0xff] }
   0xc   :  { %38 = vperm.xlu1 %345, %v32_v7   ;;  %v322_v57 = vld [vmem:[%s543_s3 + $0x28] sm:$0xff]  ;;  %v323_v58 = vld [vmem:[%s543_s3 + $0x30] sm:$0xff] }
  0x11   :  { %122 = vperm.xlu2 %346, %v108_v28  }
  0x12   :  { %117 = vperm.xlu0 %344, %v107_v8  }
  0x13   :  { %315 = vmatmul.msk.f32.gmra.mxu0 %vm56_vm0, %v29_v9 }
  0x14   :  { %112 = vperm.xlu1 %345, %v106_v10   ;;  %v251_v10 = vld [vmem:[%s545_s5] sm:$0xff]  ;;  %s402_s5 = smov [#allocation2]  }
  0x15   :  { %s302_s24 = sshll.u32 %s402_s5, 4  ;;  %s303_s24 = int_to_ptr.vmem [resolvable:$true] %s302_s24 }
  0x19   :  { %203 = vperm.xlu2 %346, %v328_v35  }
  0x1a   :  { %198 = vperm.xlu0 %344, %v327_v11  }
  0x1b   :  { %316 = vmatmul.msk.f32.gmra.mxu0 %vm56_vm0, %v30_v12 }
  0x1c   :  { %193 = vperm.xlu1 %345, %v326_v13  }
  0x21   :  { %188 = vperm.xlu2 %346, %v325_v37  }
  0x22   :  { %255 = vperm.xlu0 %344, %v252_v14  }
  0x63   :  { %v128_v40 = vpop.permute.xlu2 %127 }
  0x6b   :  { %v123_v46 = vpop.permute.xlu2 %122 }
  0x73   :  { %v204_v59 = vpop.permute.xlu2 %203 }
  0x74   :  { %v54_v17 = vpop.permute.xlu0 %53 }
  0x76   :  { %v44_v18 = vpop.permute.xlu1 %43 }
  0x7b   :  { %v189_v6 = vpop.permute.xlu2 %188 }
  0x7c   :  { %v49_v20 = vpop.permute.xlu0 %48 }
  0x7e   :  { %v39_v25 = vpop.permute.xlu1 %38 }
  0x80   :  { %v86_v15 = vpop.f32.mrf.mxu0 }
  0x81   :  { %v87_v27 = vadd.f32 %v86_v15, %v39_v25 }
  0x84   :  { %v118_v45 = vpop.permute.xlu0 %117 }
  0x86   :  { %v113_v50 = vpop.permute.xlu1 %112 }
  0x88   :  { %v89_v16 = vpop.f32.mrf.mxu0 }
  0x89   :  { %v90_v26 = vadd.f32 %v89_v16, %v44_v18 }
  0x8c   :  { %v199_v1 = vpop.permute.xlu0 %198 }
  0x8e   :  { %v194_v2 = vpop.permute.xlu1 %193 }
  0x90   :  { %v92_v19 = vpop.f32.mrf.mxu0 }
  0x91   :  { %v93_v22 = vadd.f32 %v92_v19, %v49_v20 }
  0x94   :  { %v256_v12 = vpop.permute.xlu0 %255 }
  0x98   :  { %v95_v21 = vpop.f32.mrf.mxu0 }
  0x99   :  { %v96_v23 = vadd.f32 %v95_v21, %v54_v17 }
  0x9b   :  { %347 = vtanh.f32 %v96_v23 }
  0x9c   :  { %349 = vtanh.f32 %v93_v22 }
  0x9d   :  { %351 = vtanh.f32 %v90_v26 }
  0x9e   :  { %353 = vtanh.f32 %v87_v27 }
  0xa1   :  { %v348_v29 = vpop.eup %347 }
  0xa2   :  { %155 = vmatpush.msra.mxu1 %v348_v29  ;;  %334 = vmatpush.msra.mxu3 %v348_v29  ;;  %v350_v30 = vpop.eup %349 }
  0xa3   :  { %v352_v31 = vpop.eup %351 }
  0xa4   :  { %156 = vmatpush.msra.mxu1 %v350_v30  ;;  %335 = vmatpush.msra.mxu3 %v350_v30  ;;  %v354_v34 = vpop.eup %353 }
  0xa6   :  { %157 = vmatpush.msra.mxu1 %v352_v31  ;;  %336 = vmatpush.msra.mxu3 %v352_v31 }
  0xa8   :  { %158 = vmatpush.msra.mxu1 %v354_v34  ;;  %337 = vmatpush.msra.mxu3 %v354_v34 }
  0xa9   :  { %317 = vmatmul.msk.f32.vlgmr.msra.gmra.mxu1 %vm130_vm1, %v102_v32  ;;  %320 = vmatmul.msk.f32.vlgmr.msra.gmra.mxu3 %vm130_vm1, %v105_v33 }
  0xb1   :  { %318 = vmatmul.msk.f32.gmra.mxu1 %vm130_vm1, %v103_v36 }
  0xb9   :  { %319 = vmatmul.msk.f32.gmra.mxu1 %vm130_vm1, %v104_v38 }
 0x126   :  { %v160_v39 = vpop.f32.mrf.mxu1 }
 0x127   :  { %v161_v51 = vadd.f32 %v160_v39, %v113_v50 }
 0x12c   :  { %v169_v41 = vpop.f32.mrf.mxu3 }
 0x12d   :  { %v170_v42 = vadd.f32 %v169_v41, %v128_v40 }
 0x12e   :  { %v163_v43 = vpop.f32.mrf.mxu1 }
 0x12f   :  { %355 = vtanh.f32 %v170_v42  ;;  %v164_v48 = vadd.f32 %v163_v43, %v118_v45 }
 0x135   :  { %v356_v44 = vpop.eup %355 }
 0x136   :  { %v166_v47 = vpop.f32.mrf.mxu1  ;;  %230 = vmatpush.msra.mxu2 %v356_v44  ;;  %338 = vmatpush.msrb.mxu3 %v356_v44 }
 0x137   :  { %v167_v49 = vadd.f32 %v166_v47, %v123_v46 }
 0x139   :  { %357 = vtanh.f32 %v167_v49 }
 0x13a   :  { %359 = vtanh.f32 %v164_v48 }
 0x13b   :  { %361 = vtanh.f32 %v161_v51 }
 0x13f   :  { %v358_v52 = vpop.eup %357 }
 0x140   :  { %231 = vmatpush.msra.mxu2 %v358_v52  ;;  %339 = vmatpush.msrb.mxu3 %v358_v52  ;;  %v360_v53 = vpop.eup %359 }
 0x141   :  { %v362_v56 = vpop.eup %361 }
 0x142   :  { %232 = vmatpush.msra.mxu2 %v360_v53  ;;  %340 = vmatpush.msrb.mxu3 %v360_v53 }
 0x144   :  { %233 = vmatpush.msra.mxu2 %v362_v56  ;;  %341 = vmatpush.msrb.mxu3 %v362_v56 }
 0x145   :  { %329 = vmatmul.msk.f32.vlgmr.msra.gmra.mxu2 %vm130_vm1, %v321_v54  ;;  %332 = vmatmul.msk.f32.vlgmr.msrb.gmra.mxu3 %vm130_vm1, %v324_v55 }
 0x14d   :  { %330 = vmatmul.msk.f32.gmra.mxu2 %vm130_vm1, %v322_v57 }
 0x155   :  { %331 = vmatmul.msk.f32.gmra.mxu2 %vm130_vm1, %v323_v58 }
 0x1c8   :  { %v235_v60 = vpop.f32.mrf.mxu2  ;;  %v244_v61 = vpop.f32.mrf.mxu3 }
 0x1c9   :  { %v245_v62 = vadd.f32 %v244_v61, %v204_v59  ;;  %v236_v7 = vadd.f32 %v235_v60, %v189_v6 }
 0x1cb   :  { %363 = vtanh.f32 %v245_v62 }
 0x1d0   :  { %v238_v63 = vpop.f32.mrf.mxu2 }
 0x1d1   :  { %v364_v0 = vpop.eup %363  ;;  %v239_v4 = vadd.f32 %v238_v63, %v194_v2 }
 0x1d2   :  { %273 = vmatpush.msra.mxu3 %v364_v0 }
 0x1d8   :  { %v241_v3 = vpop.f32.mrf.mxu2 }
 0x1d9   :  { %v242_v5 = vadd.f32 %v241_v3, %v199_v1 }
 0x1db   :  { %365 = vtanh.f32 %v242_v5 }
 0x1dc   :  { %367 = vtanh.f32 %v239_v4 }
 0x1dd   :  { %369 = vtanh.f32 %v236_v7 }
 0x1e1   :  { %v366_v8 = vpop.eup %365 }
 0x1e2   :  { %274 = vmatpush.msra.mxu3 %v366_v8  ;;  %v368_v9 = vpop.eup %367 }
 0x1e3   :  { %v370_v11 = vpop.eup %369 }
 0x1e4   :  { %275 = vmatpush.msra.mxu3 %v368_v9 }
 0x1e6   :  { %276 = vmatpush.msra.mxu3 %v370_v11 }
 0x1e7   :  { %333 = vmatmul.msk.f32.vlgmr.msra.gmra.mxu3 %vm130_vm1, %v251_v10 }
 0x26a   :  { %v278_v13 = vpop.f32.mrf.mxu3 }
 0x26b   :  { %v279_v14 = vadd.f32 %v278_v13, %v256_v12 }
 0x26d   :  { %v282_v15 = vand.u32 2147483647, %v279_v14  ;;  %v281_v26 = vmax.f32 %v279_v14, 0.0 }
 0x26f   :  { %v283_v16 = vsub.f32 0.0, %v282_v15 }
 0x271   :  { %v284_v17 = vmul.f32 1.442695, %v283_v16 }
 0x273   :  { %371 = vpow2.f32 %v284_v17 }
 0x279   :  { %v372_v18 = vpop.eup %371 }
 0x27a   :  { %v286_v19 = vadd.f32 1.0, %v372_v18  ;;  %v289_v20 = vmul.f32 -0.5, %v372_v18  ;;  %v292_v22 = vand.u32 2147483647, %v372_v18 }
 0x27c   :  { %373 = vlog2.f32 %v286_v19  ;;  %v290_v21 = vadd.f32 1.0, %v289_v20  ;;  %vm293_vm2 = vcmp.lt.f32.partialorder %v292_v22, 0.0004427343 }
 0x27e   :  { %v291_v25 = vmul.f32 %v372_v18, %v290_v21 }
 0x282   :  { %v374_v23 = vpop.eup %373 }
 0x283   :  { %v288_v24 = vmul.f32 0.6931472, %v374_v23 }
 0x285   :  { %v294_v27 = vsel %vm293_vm2, %v291_v25, %v288_v24 }
 0x286   :  { %v295_v28 = vadd.f32 %v294_v27, %v281_v26 }
 0x288   :  { %296 = vst [vmem:[#allocation2] sm:$0xff] %v295_v28 }
 0x289   :  { %307 = dma.vmem_to_hbm [thread:$0]  %s303_s24, 128, %s305_s1, [#allocation3]  }
 0x28a   :  { %399 = dma.done.wait [#allocation3], 128  }
 0x28b   :  { %400 = vsyncadd [#allocation3], 4294967168 }
 0x28c   :  { %312 = vsyncpa [#allocation3], 1 }

</bundles_post_ra>
